<compile_context>
chip_gen: v5e
topology: v5e:2x2
jax: 0.10.0
libtpu: 0.0.40
codegen_flags: <defaults>
</compile_context>

<pallas_src>
import jax
import jax.numpy as jnp
from jax.experimental import pallas as pl
from jax.experimental.pallas import tpu as pltpu

MIN_VALUE = -0.45   # clamp_min bound
MAX_VALUE = -1.3    # clamp_max bound
# NOTE: MAX_VALUE < MIN_VALUE, so for every finite x the clamp output is the
# constant MIN_VALUE and the result is data-independent.  We deliberately do
# NOT constant-fold this: the clamp is kept in-kernel to preserve the module's
# exact forward semantics (incl. NaN propagation) at a cost of two VPU ops.


def _clamp_conv1x1_kernel(x_ref, w_ref, b_ref, o_ref):
    # x_ref: [Cin,  P]   (VMEM, pixels on lanes)
    # w_ref: [Cout, Cin] (VMEM, tiny — padded to one (8,128) tile pair)
    # b_ref: [Cout, 1]   (VMEM)
    # o_ref: [Cout, P]   (VMEM, lane-dense output, single store)
    x = x_ref[...]
    # torch.clamp_max(x, MAX) -> min ; torch.clamp_min(., MIN) -> max
    v = jnp.maximum(jnp.minimum(x, jnp.float32(MAX_VALUE)),
                    jnp.float32(MIN_VALUE))
    # Single padded MXU contraction over the depth axis, f32 accumulation.
    acc = jnp.dot(w_ref[...], v, preferred_element_type=jnp.float32)
    o_ref[...] = (acc + b_ref[...]).astype(o_ref.dtype)


def clamp_conv1x1(x_nchw, weight, bias):
    """x_nchw: [N, Cin, H, W]; weight: [Cout, Cin, 1, 1]; bias: [Cout]."""
    N, Cin, H, W = x_nchw.shape
    Cout = weight.shape[0]
    P = N * H * W

    # [N, Cin, H, W] -> [Cin, P].  For N == 1 this is a pure reshape.
    if N == 1:
        x_cp = x_nchw.reshape(Cin, P)
    else:
        x_cp = jnp.transpose(x_nchw, (1, 0, 2, 3)).reshape(Cin, P)
    w_mat = weight.reshape(Cout, Cin)
    b_col = bias.reshape(Cout, 1)

    # TODO(synk): if reused with large feature maps, tile P along a "parallel"
    # grid axis with P_tile a multiple of 128 (e.g. 512-2048) for unmasked
    # lane-dense stores, pipelining, and megacore sharding (keep
    # (Cin+Cout)*P_tile*4B*2 under ~32 MiB scoped VMEM on v7x).  At P=144 a
    # single gridless block is optimal.
    out_cp = pl.pallas_call(
        _clamp_conv1x1_kernel,
        out_shape=jax.ShapeDtypeStruct((Cout, P), x_nchw.dtype),
        in_specs=[
            pl.BlockSpec(memory_space=pltpu.MemorySpace.VMEM),   # activations
            pl.BlockSpec(memory_space=pltpu.MemorySpace.VMEM),   # weight matrix
            pl.BlockSpec(memory_space=pltpu.MemorySpace.VMEM),   # bias column
        ],
        out_specs=pl.BlockSpec(memory_space=pltpu.MemorySpace.VMEM),
    )(x_cp, w_mat, b_col)

    # [Cout, P] -> NCHW.  For N == 1 this is again a pure reshape.
    if N == 1:
        return out_cp.reshape(1, Cout, H, W)
    return jnp.transpose(out_cp.reshape(Cout, N, H, W), (1, 0, 2, 3))


def reference(x_nchw, weight, bias):
    v1 = jnp.minimum(x_nchw, MAX_VALUE)
    v2 = jnp.maximum(v1, MIN_VALUE)
    return jax.lax.conv_general_dilated(
        v2, weight, window_strides=(1, 1), padding="VALID",
        dimension_numbers=("NCHW", "OIHW", "NCHW")) + bias.reshape(1, -1, 1, 1)


if __name__ == "__main__":
    key = jax.random.PRNGKey(0)
    kx, kw, kb = jax.random.split(key, 3)

    # Shapes implied by the module: x1 (1, 6, 12, 12), Conv2d(6, 15, kernel_size=1)
    x1 = jax.random.normal(kx, (1, 6, 12, 12), dtype=jnp.float32)
    # Deterministic synthetic parameters (PyTorch-like uniform init scale)
    fan_in = 6 * 1 * 1
    bound = 1.0 / (fan_in ** 0.5)
    weight = jax.random.uniform(kw, (15, 6, 1, 1), dtype=jnp.float32,
                                minval=-bound, maxval=bound)
    bias = jax.random.uniform(kb, (15,), dtype=jnp.float32,
                              minval=-bound, maxval=bound)

    out = clamp_conv1x1(x1, weight, bias)
    jax.block_until_ready(out)

    ref = reference(x1, weight, bias)
    assert out.shape == (1, 15, 12, 12), out.shape
    assert jnp.allclose(out, ref, atol=1e-5, rtol=1e-5), \
        float(jnp.max(jnp.abs(out - ref)))

    print("KERNEL_OK")
</pallas_src>

<mosaic_0001>
module attributes {stable_mosaic.version = 11 : i64} {
  func.func @_clamp_conv1x1_kernel(%arg0: memref<6x144xf32, #tpu.memory_space<vmem>>, %arg1: memref<15x6xf32, #tpu.memory_space<vmem>>, %arg2: memref<15x1xf32, #tpu.memory_space<vmem>>, %arg3: memref<15x144xf32, #tpu.memory_space<vmem>>) attributes {dimension_semantics = [], scalar_prefetch = 0 : i64, scratch_operands = 0 : i64, tpu.core_type = #tpu.core_type<tc>} {
    %c0 = arith.constant 0 : index
    %c0_0 = arith.constant 0 : index
    %0 = vector.load %arg0[%c0, %c0_0] : memref<6x144xf32, #tpu.memory_space<vmem>>, vector<6x144xf32>
    %cst = arith.constant -1.300000e+00 : f32
    %1 = vector.broadcast %cst : f32 to vector<6x144xf32>
    %2 = arith.minimumf %0, %1 : vector<6x144xf32>
    %cst_1 = arith.constant -4.500000e-01 : f32
    %3 = vector.broadcast %cst_1 : f32 to vector<6x144xf32>
    %4 = arith.maximumf %2, %3 : vector<6x144xf32>
    %c0_2 = arith.constant 0 : index
    %c0_3 = arith.constant 0 : index
    %5 = vector.load %arg1[%c0_2, %c0_3] : memref<15x6xf32, #tpu.memory_space<vmem>>, vector<15x6xf32>
    %cst_4 = arith.constant dense<0.000000e+00> : vector<15x144xf32>
    %6 = tpu.matmul %5, %4, %cst_4 {dimension_numbers = #tpu.dot_dimension_numbers<[1], [0], [0], [1], [0, 0, 1, 1], [], []>} : vector<15x6xf32>, vector<6x144xf32>, vector<15x144xf32> -> vector<15x144xf32>
    %c0_5 = arith.constant 0 : index
    %c0_6 = arith.constant 0 : index
    %7 = vector.load %arg2[%c0_5, %c0_6] : memref<15x1xf32, #tpu.memory_space<vmem>>, vector<15x1xf32>
    %8 = vector.broadcast %7 : vector<15x1xf32> to vector<15x144xf32>
    %9 = arith.addf %6, %8 : vector<15x144xf32>
    %c0_7 = arith.constant 0 : index
    %c0_8 = arith.constant 0 : index
    %10 = vector.load %arg3[%c0_7, %c0_8] : memref<15x144xf32, #tpu.memory_space<vmem>>, vector<15x144xf32>
    tpu.vector_store %arg3[%c0_7, %c0_8], %9 {strides = array<i32>} : memref<15x144xf32, #tpu.memory_space<vmem>>, vector<15x144xf32>,
    return
  }
}

</mosaic_0001>

<bundles_post_ra>
// kernel: tpu_custom_call.1
= control target key start
LH: loop header
LB: loop body
LE: loop exit
PB: predicated region body
PF: predicated region fallthrough
CT: control target
= control target key end

     0   :  { %v158_v4 = vmov 0   ;;  %vm42_vm0 = vcmask 1045504   ;;  %s203_s0 = inlined_call_operand.vmem [shape: f32[6,144], index: 0, kind: input, shape index: {}]   ;;  %s204_s1 = inlined_call_operand.vmem [shape: f32[15,6], index: 1, kind: input, shape index: {}]   ;;  %s205_s2 = inlined_call_operand.vmem [shape: f32[15,1], index: 2, kind: input, shape index: {}]   ;;  %s206_s3 = inlined_call_operand.hbm [shape: f32[15,144], index: 3, kind: output, shape index: {}]  }
   0x1   :  { %v15_v0 = vld [vmem:[%s203_s0] sm:$0x3f]  ;;  %v16_v1 = vld [vmem:[%s203_s0 + $0x8] sm:$0x3f]  ;;  %131 = vset.pattern.permute.xlu0 %v158_v4 }
   0x2   :  { %v17_v2 = vmin.f32 %v15_v0, -1.3  ;;  %v18_v3 = vmin.f32 %v16_v1, -1.3  ;;  %v23_v5 = vld [vmem:[%s205_s2] sm:$0xff] }
   0x3   :  { %27 = vperm.xlu0 %131, %v23_v5  }
   0x4   :  { %v19_v6 = vmax.f32 %v17_v2, -0.45  ;;  %v20_v7 = vmax.f32 %v18_v3, -0.45 }
   0x5   :  { %8 = vsyncpa [#allocation3], 0  ;;  %v21_v8 = vld [vmem:[%s204_s1] sm:$0xff]  ;;  %vm35_vm1 = vcmask 48128   ;;  %v22_v9 = vld [vmem:[%s204_s1 + $0x8] sm:$0x7f] }
   0x6   :  { %119 = vmatpush.msk.msra.mxu0 %vm42_vm0, %v19_v6  ;;  %125 = vmatpush.msk.msra.mxu2 %vm42_vm0, %v19_v6  ;;  %v24_v10 = vld [vmem:[%s205_s2 + $0x8] sm:$0x7f]  ;;  %vm96_vm2 = vcmask 130048   ;;  %s159_s1 = smov [#allocation2]   ;;  %s107_s26 = sshll.u32 %s206_s3, 4  ;;  %vm99_vm3 = vcmask 129024   ;;  %s108_s26 = int_to_ptr.hbm [resolvable:$true] %s107_s26 }
   0x7   :  { %122 = vmatpush.msk.msra.mxu1 %vm42_vm0, %v20_v7  ;;  %126 = vmatpush.msk.msra.mxu3 %vm42_vm0, %v20_v7  ;;  %s105_s23 = sshll.u32 %s159_s1, 4  ;;  %s160_s2 = smov 256   ;;  %s106_s23 = int_to_ptr.vmem [resolvable:$true] %s105_s23 }
   0x8   :  { %120 = vmatmul.msk.f32.vlgmr.msra.gmra.mxu0 %vm35_vm1, %v21_v8  ;;  %121 = vmatmul.msk.f32.vlgmr.msra.gmra.mxu2 %vm35_vm1, %v22_v9  ;;  %s161_s27 = smov 16  }
   0x9   :  { %123 = vmatmul.msk.f32.vlgmr.msra.gmra.mxu1 %vm35_vm1, %v21_v8  ;;  %124 = vmatmul.msk.f32.vlgmr.msra.gmra.mxu3 %vm35_vm1, %v22_v9 }
   0xb   :  { %32 = vperm.xlu0 %131, %v24_v10  }
  0x75   :  { %v28_v11 = vpop.permute.xlu0 %27 }
  0x7d   :  { %v33_v16 = vpop.permute.xlu0 %32 }
  0x85   :  { %v66_v12 = vpop.f32.mrf.mxu0 }
  0x86   :  { %v67_v13 = vadd.f32 %v66_v12, %v28_v11  ;;  %v89_v14 = vpop.f32.mrf.mxu1 }
  0x87   :  { %v90_v15 = vadd.f32 %v89_v14, %v28_v11 }
  0x88   :  { %95 = vst [vmem:[#allocation2] sm:$0xff] %v67_v13 }
  0x89   :  { %97 = vst.msk [vmem:[#allocation2 + $0x8] sm:$0xff] %vm96_vm2, %v90_v15 }
  0x8b   :  { %v69_v17 = vpop.f32.mrf.mxu2 }
  0x8c   :  { %v70_v18 = vadd.f32 %v69_v17, %v33_v16  ;;  %v92_v19 = vpop.f32.mrf.mxu3 }
  0x8d   :  { %v93_v20 = vadd.f32 %v92_v19, %v33_v16 }
  0x8e   :  { %98 = vst [vmem:[#allocation2 + $0x10] sm:$0x7f] %v70_v18 }
  0x8f   :  { %100 = vst.msk [vmem:[#allocation2 + $0x18] sm:$0x7f] %vm99_vm3, %v93_v20 }
  0x90   :  { %113 = dma.vmem_to_hbm [thread:$0]  %s106_s23, 512, %s108_s26, [#allocation3], %s160_s2, %s160_s2, %s161_s27  }
  0x91   :  { %156 = dma.done.wait [#allocation3], 512  }
  0x92   :  { %157 = vsyncadd [#allocation3], 4294966784 }
  0x93   :  { %118 = vsyncpa [#allocation3], 1 }

</bundles_post_ra>
